<compile_context>
chip_gen: v7x
topology: tpu7x:2x2x1
jax: 0.10.0
libtpu: 0.0.40
codegen_flags: <defaults>
</compile_context>

<pallas_src>
import functools

import jax
import jax.numpy as jnp
from jax.experimental import pallas as pl
from jax.experimental.pallas import tpu as pltpu

SUBLANE = 8
W3_PAD = 8  # final-layer N padded 1 -> 8 (small MXU tile); only column 0 is stored.


def value_net_kernel(x_ref, w1_ref, b1_ref, w2_ref, b2_ref, w3_ref, b3_ref, o_ref):
    # x tile: [TB, S] f32 -> bf16 for the MXU (cast stays in-kernel, hidden under the DMA).
    x = x_ref[...].astype(jnp.bfloat16)
    h1 = jnp.dot(x, w1_ref[...], preferred_element_type=jnp.float32) + b1_ref[...]
    h1 = jnp.maximum(h1, 0.0)                                     # ReLU in f32
    h2 = jnp.dot(h1.astype(jnp.bfloat16), w2_ref[...],
                 preferred_element_type=jnp.float32) + b2_ref[...]
    h2 = jnp.maximum(h2, 0.0)                                     # ReLU in f32
    out = jnp.dot(h2.astype(jnp.bfloat16), w3_ref[...],
                  preferred_element_type=jnp.float32) + b3_ref[...]  # [TB, 8]
    # Store only the real column -> width-1 HBM writeback (legal: equals full array dim).
    o_ref[...] = out[:, :1].astype(o_ref.dtype)                    # [TB, 1]


def _round_up(n, m):
    return ((n + m - 1) // m) * m


def prepare_params(params):
    """One-time weight prep (bf16 casts + final-layer N padding). Cache the result."""
    hidden_dim = params["w1"].shape[-1]
    w3 = jnp.zeros((hidden_dim, W3_PAD), jnp.bfloat16).at[:, :1].set(
        params["w3"].astype(jnp.bfloat16))
    b3 = jnp.zeros((1, W3_PAD), jnp.float32).at[:, :1].set(
        params["b3"].astype(jnp.float32))
    return {
        "w1": params["w1"].astype(jnp.bfloat16),
        "b1": params["b1"].astype(jnp.float32).reshape(1, -1),
        "w2": params["w2"].astype(jnp.bfloat16),
        "b2": params["b2"].astype(jnp.float32).reshape(1, -1),
        "w3": w3,
        "b3": b3,
    }


@functools.partial(jax.jit, static_argnames=("batch_tile",))
def value_network_forward(x, prep, *, batch_tile=512):
    """x: [batch, state_dim] f32; prep: output of prepare_params. Returns [batch, 1] f32."""
    batch, state_dim = x.shape

    # Pad batch only to a sublane multiple; the grid handles the ragged tail via cdiv.
    b_pad = _round_up(batch, SUBLANE)
    tb = min(batch_tile, b_pad)
    if b_pad != batch:
        x = jnp.pad(x, ((0, b_pad - batch), (0, 0)))
    grid = (pl.cdiv(b_pad, tb),)

    const2 = lambda i: (0, 0)  # weights/biases: same block every step -> stay VMEM-resident

    out = pl.pallas_call(
        value_net_kernel,
        out_shape=jax.ShapeDtypeStruct((b_pad, 1), jnp.float32),
        grid=grid,
        in_specs=[
            pl.BlockSpec((tb, state_dim), lambda i: (i, 0)),   # x tiled over batch
            pl.BlockSpec(prep["w1"].shape, const2),
            pl.BlockSpec(prep["b1"].shape, const2),
            pl.BlockSpec(prep["w2"].shape, const2),
            pl.BlockSpec(prep["b2"].shape, const2),
            pl.BlockSpec(prep["w3"].shape, const2),
            pl.BlockSpec(prep["b3"].shape, const2),
        ],
        out_specs=pl.BlockSpec((tb, 1), lambda i: (i, 0)),
        compiler_params=pltpu.CompilerParams(
            dimension_semantics=("parallel",),   # shard batch tiles across TCs on v7x
        ),
    )(x, prep["w1"], prep["b1"], prep["w2"], prep["b2"], prep["w3"], prep["b3"])

    return out[:batch]


def init_params(key, state_dim, hidden_dim):
    """Deterministic init mimicking nn.Linear's uniform(-1/sqrt(fan_in), 1/sqrt(fan_in))."""
    ks = jax.random.split(key, 6)

    def lin(kw, kb, fan_in, fan_out):
        bound = 1.0 / jnp.sqrt(fan_in)
        w = jax.random.uniform(kw, (fan_in, fan_out), jnp.float32, -bound, bound)
        b = jax.random.uniform(kb, (1, fan_out), jnp.float32, -bound, bound)
        return w, b

    w1, b1 = lin(ks[0], ks[1], state_dim, hidden_dim)
    w2, b2 = lin(ks[2], ks[3], hidden_dim, hidden_dim)
    w3, b3 = lin(ks[4], ks[5], hidden_dim, 1)
    return {"w1": w1, "b1": b1, "w2": w2, "b2": b2, "w3": w3, "b3": b3}


def reference_forward_f32(x, p):
    h = jnp.maximum(x @ p["w1"] + p["b1"], 0.0)
    h = jnp.maximum(h @ p["w2"] + p["b2"], 0.0)
    return h @ p["w3"] + p["b3"]


def reference_forward_bf16(x, p):
    bf = jnp.bfloat16
    dot = lambda a, b: jnp.dot(a.astype(bf), b.astype(bf),
                               preferred_element_type=jnp.float32)
    h = jnp.maximum(dot(x, p["w1"]) + p["b1"], 0.0)
    h = jnp.maximum(dot(h, p["w2"]) + p["b2"], 0.0)
    return dot(h, p["w3"]) + p["b3"]


if __name__ == "__main__":
    state_dim, hidden_dim = 4, 32   # CartPole-style state_dim=4

    key = jax.random.PRNGKey(0)
    k_params, k_x, k_x2 = jax.random.split(key, 3)
    params = init_params(k_params, state_dim, hidden_dim)
    prep = prepare_params(params)   # one-time weight prep (hoisted out of the hot path)

    # Small-batch path (single grid step, batch padded 2 -> 8 sublane rows).
    x = jax.random.normal(k_x, (8, state_dim), jnp.float32)
    out = jax.block_until_ready(value_network_forward(x, prep))
    assert out.shape == (8, 1)
    assert jnp.allclose(out, reference_forward_bf16(x, params), atol=1e-4, rtol=1e-4)
    assert jnp.allclose(out, reference_forward_f32(x, params), atol=5e-2, rtol=5e-2)

    # Ragged multi-tile path: batch=100, tile=64 -> cdiv grid of 2 with a masked partial
    # last tile (OOB input rows read garbage but their outputs are discarded by the slice).
    xl = jax.random.normal(k_x2, (100, state_dim), jnp.float32)
    out_l = jax.block_until_ready(value_network_forward(xl, prep, batch_tile=64))
    assert out_l.shape == (100, 1)
    assert jnp.allclose(out_l, reference_forward_bf16(xl, params), atol=1e-4, rtol=1e-4)
    assert bool(jnp.all(jnp.isfinite(out_l)))

    print("KERNEL_OK")
</pallas_src>

<mosaic_0001>
module attributes {stable_mosaic.version = 11 : i64} {
  func.func @value_net_kernel(%arg0: i32, %arg1: memref<8x4xf32, #tpu.memory_space<vmem>>, %arg2: memref<4x32xbf16, #tpu.memory_space<vmem>>, %arg3: memref<1x32xf32, #tpu.memory_space<vmem>>, %arg4: memref<32x32xbf16, #tpu.memory_space<vmem>>, %arg5: memref<1x32xf32, #tpu.memory_space<vmem>>, %arg6: memref<32x8xbf16, #tpu.memory_space<vmem>>, %arg7: memref<1x8xf32, #tpu.memory_space<vmem>>, %arg8: memref<8x1xf32, #tpu.memory_space<vmem>>) attributes {dimension_semantics = [#tpu.dimension_semantics<parallel>], iteration_bounds = array<i64: 1>, scalar_prefetch = 0 : i64, scratch_operands = 0 : i64, tpu.core_type = #tpu.core_type<tc>, window_params = [{transform_indices = @transform_0, window_bounds = array<i64: 8, 4>}, {pipeline_mode = #tpu.pipeline_mode<synchronous>, transform_indices = @transform_1, window_bounds = array<i64: 4, 32>}, {pipeline_mode = #tpu.pipeline_mode<synchronous>, transform_indices = @transform_2, window_bounds = array<i64: 1, 32>}, {pipeline_mode = #tpu.pipeline_mode<synchronous>, transform_indices = @transform_3, window_bounds = array<i64: 32, 32>}, {pipeline_mode = #tpu.pipeline_mode<synchronous>, transform_indices = @transform_4, window_bounds = array<i64: 1, 32>}, {pipeline_mode = #tpu.pipeline_mode<synchronous>, transform_indices = @transform_5, window_bounds = array<i64: 32, 8>}, {pipeline_mode = #tpu.pipeline_mode<synchronous>, transform_indices = @transform_6, window_bounds = array<i64: 1, 8>}, {transform_indices = @transform_7, window_bounds = array<i64: 8, 1>}]} {
    %c0 = arith.constant 0 : index
    %c0_0 = arith.constant 0 : index
    %0 = vector.load %arg1[%c0, %c0_0] : memref<8x4xf32, #tpu.memory_space<vmem>>, vector<8x4xf32>
    %1 = arith.truncf %0 : vector<8x4xf32> to vector<8x4xbf16>
    %c0_1 = arith.constant 0 : index
    %c0_2 = arith.constant 0 : index
    %2 = vector.load %arg2[%c0_1, %c0_2] : memref<4x32xbf16, #tpu.memory_space<vmem>>, vector<4x32xbf16>
    %cst = arith.constant dense<0.000000e+00> : vector<8x32xf32>
    %3 = tpu.matmul %1, %2, %cst {dimension_numbers = #tpu.dot_dimension_numbers<[1], [0], [0], [1], [0, 0, 1, 1], [], []>} : vector<8x4xbf16>, vector<4x32xbf16>, vector<8x32xf32> -> vector<8x32xf32>
    %c0_3 = arith.constant 0 : index
    %c0_4 = arith.constant 0 : index
    %4 = vector.load %arg3[%c0_3, %c0_4] : memref<1x32xf32, #tpu.memory_space<vmem>>, vector<1x32xf32>
    %5 = vector.broadcast %4 : vector<1x32xf32> to vector<8x32xf32>
    %6 = arith.addf %3, %5 : vector<8x32xf32>
    %cst_5 = arith.constant 0.000000e+00 : f32
    %7 = vector.broadcast %cst_5 : f32 to vector<8x32xf32>
    %8 = arith.maximumf %6, %7 : vector<8x32xf32>
    %9 = arith.truncf %8 : vector<8x32xf32> to vector<8x32xbf16>
    %c0_6 = arith.constant 0 : index
    %c0_7 = arith.constant 0 : index
    %10 = vector.load %arg4[%c0_6, %c0_7] : memref<32x32xbf16, #tpu.memory_space<vmem>>, vector<32x32xbf16>
    %cst_8 = arith.constant dense<0.000000e+00> : vector<8x32xf32>
    %11 = tpu.matmul %9, %10, %cst_8 {dimension_numbers = #tpu.dot_dimension_numbers<[1], [0], [0], [1], [0, 0, 1, 1], [], []>} : vector<8x32xbf16>, vector<32x32xbf16>, vector<8x32xf32> -> vector<8x32xf32>
    %c0_9 = arith.constant 0 : index
    %c0_10 = arith.constant 0 : index
    %12 = vector.load %arg5[%c0_9, %c0_10] : memref<1x32xf32, #tpu.memory_space<vmem>>, vector<1x32xf32>
    %13 = vector.broadcast %12 : vector<1x32xf32> to vector<8x32xf32>
    %14 = arith.addf %11, %13 : vector<8x32xf32>
    %cst_11 = arith.constant 0.000000e+00 : f32
    %15 = vector.broadcast %cst_11 : f32 to vector<8x32xf32>
    %16 = arith.maximumf %14, %15 : vector<8x32xf32>
    %17 = arith.truncf %16 : vector<8x32xf32> to vector<8x32xbf16>
    %c0_12 = arith.constant 0 : index
    %c0_13 = arith.constant 0 : index
    %18 = vector.load %arg6[%c0_12, %c0_13] : memref<32x8xbf16, #tpu.memory_space<vmem>>, vector<32x8xbf16>
    %cst_14 = arith.constant dense<0.000000e+00> : vector<8x8xf32>
    %19 = tpu.matmul %17, %18, %cst_14 {dimension_numbers = #tpu.dot_dimension_numbers<[1], [0], [0], [1], [0, 0, 1, 1], [], []>} : vector<8x32xbf16>, vector<32x8xbf16>, vector<8x8xf32> -> vector<8x8xf32>
    %c0_15 = arith.constant 0 : index
    %c0_16 = arith.constant 0 : index
    %20 = vector.load %arg7[%c0_15, %c0_16] : memref<1x8xf32, #tpu.memory_space<vmem>>, vector<1x8xf32>
    %21 = vector.broadcast %20 : vector<1x8xf32> to vector<8x8xf32>
    %22 = arith.addf %19, %21 : vector<8x8xf32>
    %23 = vector.extract_strided_slice %22 {offsets = [0, 0], sizes = [8, 1], strides = [1, 1]} : vector<8x8xf32> to vector<8x1xf32>
    %c0_17 = arith.constant 0 : index
    %c0_18 = arith.constant 0 : index
    %24 = vector.load %arg8[%c0_17, %c0_18] : memref<8x1xf32, #tpu.memory_space<vmem>>, vector<8x1xf32>
    tpu.vector_store %arg8[%c0_17, %c0_18], %23 {strides = array<i32>} : memref<8x1xf32, #tpu.memory_space<vmem>>, vector<8x1xf32>,
    return
  }
  func.func @transform_0(%arg0: i32) -> (i32, i32) {
    %c0_i32 = arith.constant 0 : i32
    %c0_i32_0 = arith.constant 0 : i32
    return %arg0, %c0_i32 : i32, i32
  }
  func.func @transform_1(%arg0: i32) -> (i32, i32) {
    %c0_i32 = arith.constant 0 : i32
    %c0_i32_0 = arith.constant 0 : i32
    %c0_i32_1 = arith.constant 0 : i32
    return %c0_i32, %c0_i32_0 : i32, i32
  }
  func.func @transform_2(%arg0: i32) -> (i32, i32) {
    %c0_i32 = arith.constant 0 : i32
    %c0_i32_0 = arith.constant 0 : i32
    %c0_i32_1 = arith.constant 0 : i32
    return %c0_i32, %c0_i32_0 : i32, i32
  }
  func.func @transform_3(%arg0: i32) -> (i32, i32) {
    %c0_i32 = arith.constant 0 : i32
    %c0_i32_0 = arith.constant 0 : i32
    %c0_i32_1 = arith.constant 0 : i32
    return %c0_i32, %c0_i32_0 : i32, i32
  }
  func.func @transform_4(%arg0: i32) -> (i32, i32) {
    %c0_i32 = arith.constant 0 : i32
    %c0_i32_0 = arith.constant 0 : i32
    %c0_i32_1 = arith.constant 0 : i32
    return %c0_i32, %c0_i32_0 : i32, i32
  }
  func.func @transform_5(%arg0: i32) -> (i32, i32) {
    %c0_i32 = arith.constant 0 : i32
    %c0_i32_0 = arith.constant 0 : i32
    %c0_i32_1 = arith.constant 0 : i32
    return %c0_i32, %c0_i32_0 : i32, i32
  }
  func.func @transform_6(%arg0: i32) -> (i32, i32) {
    %c0_i32 = arith.constant 0 : i32
    %c0_i32_0 = arith.constant 0 : i32
    %c0_i32_1 = arith.constant 0 : i32
    return %c0_i32, %c0_i32_0 : i32, i32
  }
  func.func @transform_7(%arg0: i32) -> (i32, i32) {
    %c0_i32 = arith.constant 0 : i32
    %c0_i32_0 = arith.constant 0 : i32
    return %arg0, %c0_i32 : i32, i32
  }
}

</mosaic_0001>

<bundles_post_ra>
// kernel: value_network_forward.1
= control target key start
LH: loop header
LB: loop body
LE: loop exit
PB: predicated region body
PF: predicated region fallthrough
CT: control target
= control target key end

     0   :  { %vm41_vm0 = vcmask 1041408   ;;  %v274_v0 = vmov 0.0   ;;  %vm275_vm1 = vmmov 0   ;;  %vm37_vm2 = vcmask 31744   ;;  %s346_s1 = inlined_call_operand.vmem [shape: bf16[4,32], index: 1, kind: input, shape index: {}]   ;;  %s347_s0 = inlined_call_operand.vmem [shape: f32[8,4], index: 0, kind: input, shape index: {}]   ;;  %s348_s3 = inlined_call_operand.vmem [shape: bf16[32,32], index: 3, kind: input, shape index: {}]   ;;  %s349_s5 = inlined_call_operand.vmem [shape: bf16[32,8], index: 5, kind: input, shape index: {}]   ;;  %s350_s2 = inlined_call_operand.vmem [shape: f32[1,32], index: 2, kind: input, shape index: {}]   ;;  %s351_s4 = inlined_call_operand.vmem [shape: f32[1,32], index: 4, kind: input, shape index: {}]   ;;  %s352_s6 = inlined_call_operand.vmem [shape: f32[1,8], index: 6, kind: input, shape index: {}]   ;;  %s353_s7 = inlined_call_operand.vmem [shape: f32[8,1], index: 7, kind: output, shape index: {}]  }
   0x1   :  { %246 = vmatprep.subr.bf16.mxu0 %v274_v0  ;;  %v29_v1 = vld [vmem:[%s346_s1] sm:$0x3]  ;;  %248 = vmatprep.mubr.msk.bf16.mxu0 %vm275_vm1, %v274_v0  ;;  %v271_v6 = vld [vmem:[%s348_s3 + $0x8] sm:$0xff]   ;;  %vm110_vm3 = vcmask 261120   ;;  %vm222_vm4 = vcmask 7168  }
   0x2   :  { %v27_v2 = vld [vmem:[%s347_s0] sm:$0xff]  ;;  %v43_v3 = vsel %vm41_vm0, %v29_v1, 0  ;;  %252 = vmatprep.subr.bf16.mxu1 %v274_v0  ;;  %256 = vmatprep.mubr.msk.bf16.mxu1 %vm275_vm1, %v274_v0  ;;  %v273_v16 = vld [vmem:[%s349_s5 + $0x8] sm:$0xff]  }
   0x3   :  { %v28_v4 = vpack.c.bf16 %v27_v2, %v27_v2  ;;  %247 = vmatpush3.bf16.msra.mxu0 %v43_v3  ;;  %v270_v5 = vld [vmem:[%s348_s3] sm:$0xff]  }
   0x4   :  { %260 = vmatprep.subr.bf16.mxu0 %v274_v0  ;;  %253 = vmatpush3.bf16.msra.mxu1 %v270_v5  ;;  %v272_v7 = vld [vmem:[%s349_s5] sm:$0xff]  }
   0x5   :  { %254 = vmatprep.subr.bf16.mxu1 %v274_v0  ;;  %v228_v8 = vld [vmem:[%s350_s2] ss:$0 sm:$0xff] }
   0x6   :  { %249 = vmatmul.mubr.msk.bf16.vlgmr.msra.gmra.mrb[0].mxu0 %vm37_vm2, %v28_v4  ;;  %v230_v17 = vld [vmem:[%s351_s4] ss:$0 sm:$0xff] }
   0x7   :  { %264 = vmatprep.mubr.msk.bf16.mxu0 %vm275_vm1, %v274_v0  ;;  %261 = vmatpush3.bf16.msra.mxu0 %v272_v7  ;;  %v234_v25 = vld [vmem:[%s352_s6] ss:$0 sm:$0xff] }
   0x8   :  { %255 = vmatpush3.bf16.msra.mxu1 %v271_v6  ;;  %262 = vmatprep.subr.bf16.mxu0 %v274_v0 }
   0xb   :  { %263 = vmatpush3.bf16.msra.mxu0 %v273_v16 }
  0xd9   :  { %v79_v9 = vpop.f32.mrb[0].mxu0 }
  0xda   :  { %v80_v10 = vadd.f32 %v228_v8, %v79_v9  ;;  %v250_v11 = vpop.f32.mrb[1].mxu0 }
  0xdb   :  { %v82_v12 = vpop.f32.mrb[2].mxu0 }
  0xdc   :  { %v85_v13 = vmax.f32 %v80_v10, 0.0  ;;  %v251_v14 = vpop.f32.mrb[3].mxu0 }
  0xde   :  { %v86_v15 = vpack.c.bf16 %v85_v13, %v85_v13 }
  0xe0   :  { %257 = vmatmul.mubr.msk.bf16.vlgmr.msra.gmra.mrb[0].mxu1 %vm110_vm3, %v86_v15 }
 0x1b3   :  { %v148_v18 = vpop.f32.mrb[0].mxu1 }
 0x1b4   :  { %v149_v19 = vadd.f32 %v230_v17, %v148_v18  ;;  %v258_v20 = vpop.f32.mrb[1].mxu1 }
 0x1b5   :  { %v151_v21 = vpop.f32.mrb[2].mxu1 }
 0x1b6   :  { %v154_v22 = vmax.f32 %v149_v19, 0.0  ;;  %v259_v23 = vpop.f32.mrb[3].mxu1 }
 0x1b8   :  { %v155_v24 = vpack.c.bf16 %v154_v22, %v154_v22 }
 0x1ba   :  { %265 = vmatmul.mubr.msk.bf16.vlgmr.msra.gmra.mrb[4].mxu0 %vm110_vm3, %v155_v24 }
 0x28d   :  { %v216_v26 = vpop.f32.mrb[4].mxu0 }
 0x28e   :  { %v217_v27 = vadd.f32 %v234_v25, %v216_v26  ;;  %v266_v28 = vpop.f32.mrb[5].mxu0 }
 0x28f   :  { %v219_v29 = vpop.f32.mrb[6].mxu0 }
 0x290   :  { %223 = vst.msk [vmem:[%s353_s7] sm:$0xff] %vm222_vm4, %v217_v27  ;;  %v267_v30 = vpop.f32.mrb[7].mxu0 }

</bundles_post_ra>
